<compile_context>
chip_gen: v7x
topology: tpu7x:2x2x1
jax: 0.10.0
libtpu: 0.0.40
codegen_flags: <defaults>
</compile_context>

<pallas_src>
import functools
import math

import jax
import jax.numpy as jnp
from jax import lax
from jax.experimental import pallas as pl
from jax.experimental.pallas import tpu as pltpu

_BIG = 1e30        # "infinity" for already-selected columns in the 3-NN loop
_SENTINEL = 1e15   # xyz value for padded neighbour columns (d2 ~ 3e30 >> real)


def _round_up(x, m):
    return ((x + m - 1) // m) * m


# ----------------------------------------------------------------------------
# Kernel 1: temporal pointwise conv (BN scale folded into W) + shift + ReLU
# ----------------------------------------------------------------------------
def _temporal_kernel(x_ref, w_ref, shift_ref, o_ref, *, apply_relu):
    x = x_ref[0]                                                 # (Cin, tile) f32
    y = jnp.dot(w_ref[...], x, preferred_element_type=jnp.float32)
    y = y + shift_ref[...]                                       # folded BN shift (+bias)
    if apply_relu:
        y = jnp.maximum(y, 0.0)
    o_ref[0] = y.astype(o_ref.dtype)                             # bf16 store


def _pick_temporal_tile(n2, cin, kc):
    if n2 % 128 != 0:
        return n2                       # full-extent lane block, no padding pass
    per_lane = 2 * (cin * 4 + kc * 2)   # double-buffered f32 in + bf16 out
    for t in (2048, 1024, 512, 256, 128):
        if n2 % t == 0 and t * per_lane <= 24 * 1024 * 1024:
            return t
    return 128


def temporal_conv(feat_bl, w_eff, shift, tile, apply_relu):
    BL, Cin, N2 = feat_bl.shape
    KC = w_eff.shape[0]
    kern = functools.partial(_temporal_kernel, apply_relu=apply_relu)
    return pl.pallas_call(
        kern,
        out_shape=jax.ShapeDtypeStruct((BL, KC, N2), jnp.bfloat16),
        grid_spec=pltpu.PrefetchScalarGridSpec(
            num_scalar_prefetch=0,
            grid=(BL, N2 // tile),
            in_specs=[
                pl.BlockSpec((1, Cin, tile), lambda i, n: (i, 0, n)),
                pl.BlockSpec((KC, Cin), lambda i, n: (0, 0)),
                pl.BlockSpec((KC, 1), lambda i, n: (0, 0)),
            ],
            out_specs=pl.BlockSpec((1, KC, tile), lambda i, n: (i, 0, n)),
        ),
        compiler_params=pltpu.CompilerParams(
            dimension_semantics=("parallel", "parallel"),
            vmem_limit_bytes=32 * 1024 * 1024),
    )(feat_bl, w_eff, shift)


# ----------------------------------------------------------------------------
# Kernel 2: fused 3-NN inverse-distance interpolation + spatial pointwise conv
# ----------------------------------------------------------------------------
def _spatial_kernel(anchor_ref, neighT_ref, feat_ref, orig_ref,
                    wm_ref, wo_ref, b_ref, o_ref):
    a = anchor_ref[0, 0]                                  # (tN1, 3)   f32
    nbT = neighT_ref[0, 0]                                # (3, Mp)    f32 (sentinel pad)
    feats = feat_ref[0, 0].astype(jnp.float32)            # (Cmid, Mp) bf16 -> f32
    orig = orig_ref[0, 0].astype(jnp.float32)             # (Cop, tN1) bf16 -> f32

    # squared pairwise distances: ||a||^2 + ||n||^2 - 2 a.n  (no full-matrix sqrt).
    # Keep the cross term on the MXU (VPU is the saturating slot); HIGHEST
    # precision so the 3-NN selection matches an exact-f32 reference.
    a_sq = jnp.sum(a * a, axis=1, keepdims=True)                         # (tN1, 1)
    n_sq = jnp.sum(nbT * nbT, axis=0, keepdims=True)                     # (1, Mp)
    cross = jnp.dot(a, nbT, preferred_element_type=jnp.float32,
                    precision=lax.Precision.HIGHEST)                     # (tN1, Mp)
    d2 = jnp.maximum(a_sq + n_sq - 2.0 * cross, 0.0)

    n1, m = d2.shape
    col = lax.broadcasted_iota(jnp.int32, (1, m), 1)   # (1, Mp) broadcast iota

    # three_nn on squared distances, first-occurrence tie break; sentinel
    # columns (padded neighbours) are never selected.  Selection mask `sel`
    # is computed once per iteration and reused; sqrt/recip only on the
    # three (tN1, 1) minima.
    d_work = d2
    wacc = jnp.zeros((n1, m), jnp.float32)
    norm = jnp.zeros((n1, 1), jnp.float32)
    for _ in range(3):
        dmin = jnp.min(d_work, axis=1, keepdims=True)                    # (tN1, 1)
        cand = jnp.where(d_work == dmin, col, m)
        imin = jnp.min(cand, axis=1, keepdims=True)                      # first occurrence
        sel = col == imin                                                # (tN1, Mp)
        recip = 1.0 / (jnp.sqrt(dmin) + 1e-8)                            # Euclidean
        wacc = jnp.where(sel, wacc + recip, wacc)
        norm = norm + recip
        d_work = jnp.where(sel, _BIG, d_work)

    # three_interpolate with DEFERRED normalisation: contract the neighbour
    # axis with the unnormalised weights, then scale the small (tN1, Cmid)
    # result by an approximate reciprocal (EUP slot).
    interp_t = lax.dot_general(wacc, feats, (((1,), (1,)), ((), ())),
                               preferred_element_type=jnp.float32)       # (tN1, Cmid)
    interp_t = interp_t * pl.reciprocal(norm, approx=True)

    # spatial pointwise conv on [interpolated ; original_features] + bias
    out = (lax.dot_general(wm_ref[...], interp_t, (((1,), (1,)), ((), ())),
                           preferred_element_type=jnp.float32)           # (Cout, tN1)
           + jnp.dot(wo_ref[...], orig, preferred_element_type=jnp.float32)
           + b_ref[...])
    o_ref[0, 0] = out


def _pick_tile_n1(n1p, mp):
    # ~8 live (t, Mp) f32 temporaries in the fully unrolled 3-NN loop;
    # stay well under the v7x 64 MiB VMEM.
    for t in (512, 256, 128):
        if n1p % t == 0 and 8 * t * mp * 4 <= 24 * 1024 * 1024:
            return t
    return 128


def spatial_interp_conv(anchor, neighT, seed_feats, orig_feats,
                        w_mid, w_skip, bias, tile_n1):
    B, L1, N1p, _ = anchor.shape
    Mp = neighT.shape[3]
    Cmid = seed_feats.shape[2]
    Cop = orig_feats.shape[2]
    Cout = w_mid.shape[0]
    grid = (L1, B, N1p // tile_n1)
    return pl.pallas_call(
        _spatial_kernel,
        out_shape=jax.ShapeDtypeStruct((B, L1, Cout, N1p), jnp.float32),
        grid_spec=pltpu.PrefetchScalarGridSpec(
            num_scalar_prefetch=0,
            grid=grid,
            in_specs=[
                pl.BlockSpec((1, 1, tile_n1, 3), lambda t, b, n: (b, t, n, 0)),
                pl.BlockSpec((1, 1, 3, Mp), lambda t, b, n: (t, b, 0, 0)),
                pl.BlockSpec((1, 1, Cmid, Mp), lambda t, b, n: (t, b, 0, 0)),
                pl.BlockSpec((1, 1, Cop, tile_n1), lambda t, b, n: (b, t, 0, n)),
                pl.BlockSpec((Cout, Cmid), lambda t, b, n: (0, 0)),
                pl.BlockSpec((Cout, Cop), lambda t, b, n: (0, 0)),
                pl.BlockSpec((Cout, 1), lambda t, b, n: (0, 0)),
            ],
            out_specs=pl.BlockSpec((1, 1, Cout, tile_n1),
                                   lambda t, b, n: (b, t, 0, n)),
        ),
        compiler_params=pltpu.CompilerParams(
            # (L1, B) parallel -> the megacore split stays on the frame/batch
            # axes (per-(t1,b) feat/neighT blocks stay resident on one core);
            # inner N1-tile axis is arbitrary.
            dimension_semantics=("parallel", "parallel", "arbitrary"),
            vmem_limit_bytes=40 * 1024 * 1024),
    )(anchor, neighT, seed_feats, orig_feats, w_mid, w_skip, bias)


# ----------------------------------------------------------------------------
# Module wrapper
# ----------------------------------------------------------------------------
class PSTConvTranspose:
    def __init__(self, in_planes, mid_planes, out_planes, temporal_kernel_size,
                 temporal_stride=1, temporal_padding=(0, 0),
                 original_in_planes=0, bias=False, batch_norm=True,
                 activation=True, key=None):
        self.in_planes = in_planes
        self.mid_planes = mid_planes
        self.out_planes = out_planes
        self.temporal_kernel_size = temporal_kernel_size
        self.temporal_radius = math.floor(temporal_kernel_size / 2)
        self.temporal_stride = temporal_stride
        self.temporal_padding = tuple(temporal_padding)
        self.apply_relu = bool(activation)

        if key is None:
            key = jax.random.PRNGKey(0)
        k1, k2, k3, k4, k5, k6 = jax.random.split(key, 6)
        KC = temporal_kernel_size * mid_planes

        # Conv1d(in_planes -> K*mid_planes, kernel 1)
        self.w_temporal = (
            jax.random.normal(k1, (KC, in_planes), jnp.float32)
            / math.sqrt(max(in_planes, 1)))
        b_temporal = (0.01 * jax.random.normal(k5, (KC,), jnp.float32)
                      if bias else jnp.zeros((KC,), jnp.float32))

        # eval-mode BatchNorm1d(mid_planes) folded into a per-channel affine
        if batch_norm:
            gamma = 1.0 + 0.1 * jax.random.normal(k2, (mid_planes,), jnp.float32)
            beta = 0.1 * jax.random.normal(k3, (mid_planes,), jnp.float32)
            running_mean = jnp.zeros((mid_planes,), jnp.float32)
            running_var = jnp.ones((mid_planes,), jnp.float32)
            eps = 1e-5
            scale = gamma / jnp.sqrt(running_var + eps)
            shift = beta - running_mean * scale
        else:
            scale = jnp.ones((mid_planes,), jnp.float32)
            shift = jnp.zeros((mid_planes,), jnp.float32)
        # output channel i*C_mid + j uses BN parameter j  -> tile across K;
        # fold the (optional) temporal conv bias into the shift.
        scale_kc = jnp.tile(scale, temporal_kernel_size)
        shift_kc = jnp.tile(shift, temporal_kernel_size) + scale_kc * b_temporal
        self.bn_scale = scale_kc.reshape(-1, 1)          # kept for the reference
        self.bn_shift = shift_kc.reshape(-1, 1)
        # scale*(W@x + b) == (scale*W)@x + shift  -> fold the scale into W
        self.w_temporal_eff = self.w_temporal * self.bn_scale

        # Conv1d(mid_planes + original_in_planes -> out_planes, kernel 1)
        cin_sp = mid_planes + original_in_planes
        self.w_spatial = (
            jax.random.normal(k4, (out_planes, cin_sp), jnp.float32)
            / math.sqrt(max(cin_sp, 1)))
        self.b_spatial = (0.01 * jax.random.normal(k6, (out_planes,), jnp.float32)
                          if bias else None)

    def __call__(self, xyzs, original_xyzs, features, original_features=None):
        B, L2, N2, _ = xyzs.shape
        L1, N1 = original_xyzs.shape[1], original_xyzs.shape[2]
        K = self.temporal_kernel_size
        r = self.temporal_radius
        stride = self.temporal_stride
        pad = self.temporal_padding
        if K > 1 and stride > 1:
            assert (L2 - 1) * stride + sum(pad) + K == L1, \
                "PSTConvTranspose: Temporal parameter error!"

        Cin, Cmid, Cout = self.in_planes, self.mid_planes, self.out_planes
        KC = K * Cmid

        # ---- Kernel 1: temporal pointwise conv in native layout -------------
        tile_n2 = _pick_temporal_tile(N2, Cin, KC)
        feat_bl = features.reshape(B * L2, Cin, N2)          # free leading merge
        t_flat = temporal_conv(feat_bl, self.w_temporal_eff, self.bn_shift,
                               tile_n2, self.apply_relu)
        t_out = t_flat.reshape(B, L2, KC, N2)                # (B,L2,KC,N2) bf16

        # ---- static seed schedule per output frame (same as the reference) --
        middles, deltas = [], []
        for t2 in range(1, L2 + 1):
            middle = t2 + (t2 - 1) * (stride - 1) + r + pad[0]
            middles.append(middle)
            deltas.append(range(middle - r, middle + r + pad[1] + 1))

        seed_plan = []
        for t1 in range(1, L1 + 1):
            plan = [(t2i, t1 - middles[t2i] + r)
                    for t2i in range(L2) if t1 in deltas[t2i]]
            assert plan, ("PSTConvTranspose: output frame %d has no "
                          "contributing seed frames" % t1)
            assert len(plan) * N2 >= 3, \
                "PSTConvTranspose: fewer than 3 seed points for three_nn"
            seed_plan.append(plan)
        Kmax = max(len(p) for p in seed_plan)

        # ---- seed unions: per-seed blocks of width N2p; padded xyz columns
        # carry a huge sentinel so 3-NN never selects them (no in-kernel mask).
        N2p = _round_up(N2, 128)
        Mp = Kmax * N2p
        t_out_p = jnp.pad(t_out, ((0, 0), (0, 0), (0, 0), (0, N2p - N2)))
        xyzT = jnp.transpose(xyzs, (0, 1, 3, 2))             # (B,L2,3,N2) tiny
        xyzT = jnp.pad(xyzT, ((0, 0), (0, 0), (0, 0), (0, N2p - N2)),
                       constant_values=_SENTINEL)

        neigh_list, feat_list = [], []
        for plan in seed_plan:
            nb = jnp.concatenate([xyzT[:, t2i] for t2i, _ in plan], axis=2)
            ft = jnp.concatenate(
                [t_out_p[:, t2i, off * Cmid:(off + 1) * Cmid, :]
                 for t2i, off in plan], axis=2)
            extra = Mp - nb.shape[2]
            nb = jnp.pad(nb, ((0, 0), (0, 0), (0, extra)),
                         constant_values=_SENTINEL)
            ft = jnp.pad(ft, ((0, 0), (0, 0), (0, extra)))
            neigh_list.append(nb)
            feat_list.append(ft)
        neighT_all = jnp.stack(neigh_list, axis=0)           # (L1,B,3,Mp)   f32
        feat_all = jnp.stack(feat_list, axis=0)              # (L1,B,Cmid,Mp) bf16

        # ---- Kernel 2 inputs: pad N1 lanes and skip channels -----------------
        N1p = _round_up(N1, 128)
        tile_n1 = _pick_tile_n1(N1p, Mp)
        anchor = jnp.pad(original_xyzs,
                         ((0, 0), (0, 0), (0, N1p - N1), (0, 0)))  # (B,L1,N1p,3)

        c_orig = 0 if original_features is None else original_features.shape[2]
        c_orig_p = _round_up(max(c_orig, 1), 16)
        if original_features is None:
            orig = jnp.zeros((B, L1, c_orig_p, N1p), jnp.bfloat16)
        else:
            orig = jnp.pad(original_features,
                           ((0, 0), (0, 0), (0, c_orig_p - c_orig),
                            (0, N1p - N1))).astype(jnp.bfloat16)

        w_mid = self.w_spatial[:, :Cmid]                          # (Cout, Cmid)
        w_skip = jnp.pad(self.w_spatial[:, Cmid:],
                         ((0, 0), (0, c_orig_p - c_orig)))        # (Cout, Cop)
        bias = (self.b_spatial.reshape(-1, 1) if self.b_spatial is not None
                else jnp.zeros((Cout, 1), jnp.float32))

        out_p = spatial_interp_conv(anchor, neighT_all, feat_all, orig,
                                    w_mid, w_skip, bias, tile_n1)
        new_features = out_p[:, :, :, :N1]
        return original_xyzs, new_features


# ----------------------------------------------------------------------------
# Pure-JAX reference (exact f32, HIGHEST-precision matmuls) for verification
# ----------------------------------------------------------------------------
def _reference_forward(module, xyzs, original_xyzs, features, original_features):
    hp = jax.lax.Precision.HIGHEST
    B, L2, N2, _ = xyzs.shape
    L1 = original_xyzs.shape[1]
    r = module.temporal_radius
    stride, pad = module.temporal_stride, module.temporal_padding
    Cmid = module.mid_planes

    t_out = jnp.einsum('oc,blcn->blon', module.w_temporal, features, precision=hp)
    t_out = (t_out * module.bn_scale[None, None, :, :]
             + module.bn_shift[None, None, :, :])
    if module.apply_relu:
        t_out = jnp.maximum(t_out, 0.0)

    middles, deltas = [], []
    for t2 in range(1, L2 + 1):
        middle = t2 + (t2 - 1) * (stride - 1) + r + pad[0]
        middles.append(middle)
        deltas.append(range(middle - r, middle + r + pad[1] + 1))

    outs = []
    for t1 in range(1, L1 + 1):
        sx, sf = [], []
        for t2i in range(L2):
            if t1 in deltas[t2i]:
                off = t1 - middles[t2i] + r
                sx.append(xyzs[:, t2i])
                sf.append(t_out[:, t2i, off * Cmid:(off + 1) * Cmid, :])
        nxyz = jnp.concatenate(sx, axis=1)            # (B, M, 3)
        sfeat = jnp.concatenate(sf, axis=2)           # (B, Cmid, M)
        a = original_xyzs[:, t1 - 1]                  # (B, N1, 3)
        a_sq = jnp.sum(a * a, axis=2, keepdims=True)
        n_sq = jnp.sum(nxyz * nxyz, axis=2)[:, None, :]
        cross = jnp.einsum('bnd,bmd->bnm', a, nxyz, precision=hp)
        d2 = jnp.maximum(a_sq + n_sq - 2.0 * cross, 0.0)
        m = d2.shape[2]
        col = jnp.arange(m, dtype=jnp.int32)[None, None, :]
        d_work = d2
        wmat = jnp.zeros_like(d2)
        norm = jnp.zeros(d2.shape[:2] + (1,), jnp.float32)
        for _ in range(3):
            dmin = jnp.min(d_work, axis=2, keepdims=True)
            cand = jnp.where(d_work == dmin, col, m)
            imin = jnp.min(cand, axis=2, keepdims=True)
            onehot = (col == imin).astype(jnp.float32)
            recip = 1.0 / (jnp.sqrt(dmin) + 1e-8)
            wmat = wmat + onehot * recip
            norm = norm + recip
            d_work = jnp.where(col == imin, _BIG, d_work)
        wmat = wmat / norm
        interp = jnp.einsum('bcm,bnm->bcn', sfeat, wmat, precision=hp)
        if original_features is not None:
            cat = jnp.concatenate([interp, original_features[:, t1 - 1]], axis=1)
        else:
            cat = interp
        out = jnp.einsum('oc,bcn->bon', module.w_spatial, cat, precision=hp)
        if module.b_spatial is not None:
            out = out + module.b_spatial[None, :, None]
        outs.append(out)
    return jnp.stack(outs, axis=1)


if __name__ == "__main__":
    key = jax.random.PRNGKey(0)
    kx, kox, kf, kof, kp = jax.random.split(key, 5)

    B, L2, N2, Cin = 2, 2, 16, 4
    Cmid, Cout, K, stride = 8, 16, 3, 2
    pad = (0, 0)
    L1 = (L2 - 1) * stride + sum(pad) + K          # = 5
    N1, Corig = 32, 6

    xyzs = jax.random.normal(kx, (B, L2, N2, 3), jnp.float32)
    original_xyzs = jax.random.normal(kox, (B, L1, N1, 3), jnp.float32)
    features = jax.random.normal(kf, (B, L2, Cin, N2), jnp.float32)
    original_features = jax.random.normal(kof, (B, L1, Corig, N1), jnp.float32)

    module = PSTConvTranspose(Cin, Cmid, Cout, K, temporal_stride=stride,
                              temporal_padding=pad, original_in_planes=Corig,
                              key=kp)

    new_xyzs, new_features = module(xyzs, original_xyzs, features,
                                    original_features)
    jax.block_until_ready(new_features)

    assert new_xyzs.shape == (B, L1, N1, 3)
    assert new_features.shape == (B, L1, Cout, N1)
    assert bool(jnp.all(jnp.isfinite(new_features)))

    # Tolerance sized for bf16 matmul-operand streams vs. an exact-f32 reference.
    ref = _reference_forward(module, xyzs, original_xyzs, features,
                             original_features)
    rel_err = (jnp.max(jnp.abs(ref - new_features))
               / (jnp.max(jnp.abs(ref)) + 1e-9))
    assert float(rel_err) < 6e-2, f"normalized max error too large: {float(rel_err)}"

    print("KERNEL_OK")
</pallas_src>

<mosaic_0001>
module attributes {stable_mosaic.version = 11 : i64} {
  func.func @_temporal_kernel(%arg0: i32, %arg1: i32, %arg2: memref<1x4x16xf32, #tpu.memory_space<vmem>>, %arg3: memref<24x4xf32, #tpu.memory_space<vmem>>, %arg4: memref<24x1xf32, #tpu.memory_space<vmem>>, %arg5: memref<1x24x16xbf16, #tpu.memory_space<vmem>>) attributes {dimension_semantics = [#tpu.dimension_semantics<parallel>, #tpu.dimension_semantics<parallel>], iteration_bounds = array<i64: 4, 1>, scalar_prefetch = 0 : i64, scratch_operands = 0 : i64, tpu.core_type = #tpu.core_type<tc>, window_params = [{transform_indices = @transform_0, window_bounds = array<i64: 1, 4, 16>}, {pipeline_mode = #tpu.pipeline_mode<synchronous>, transform_indices = @transform_1, window_bounds = array<i64: 24, 4>}, {pipeline_mode = #tpu.pipeline_mode<synchronous>, transform_indices = @transform_2, window_bounds = array<i64: 24, 1>}, {transform_indices = @transform_3, window_bounds = array<i64: 1, 24, 16>}]} {
    %c0 = arith.constant 0 : index
    %c0_0 = arith.constant 0 : index
    %c0_1 = arith.constant 0 : index
    %0 = vector.load %arg2[%c0, %c0_0, %c0_1] : memref<1x4x16xf32, #tpu.memory_space<vmem>>, vector<1x4x16xf32>
    %1 = vector.shape_cast %0 : vector<1x4x16xf32> to vector<4x16xf32>
    %c0_2 = arith.constant 0 : index
    %c0_3 = arith.constant 0 : index
    %2 = vector.load %arg3[%c0_2, %c0_3] : memref<24x4xf32, #tpu.memory_space<vmem>>, vector<24x4xf32>
    %cst = arith.constant dense<0.000000e+00> : vector<24x16xf32>
    %3 = tpu.matmul %2, %1, %cst {dimension_numbers = #tpu.dot_dimension_numbers<[1], [0], [0], [1], [0, 0, 1, 1], [], []>} : vector<24x4xf32>, vector<4x16xf32>, vector<24x16xf32> -> vector<24x16xf32>
    %c0_4 = arith.constant 0 : index
    %c0_5 = arith.constant 0 : index
    %4 = vector.load %arg4[%c0_4, %c0_5] : memref<24x1xf32, #tpu.memory_space<vmem>>, vector<24x1xf32>
    %5 = vector.broadcast %4 : vector<24x1xf32> to vector<24x16xf32>
    %6 = arith.addf %3, %5 : vector<24x16xf32>
    %cst_6 = arith.constant 0.000000e+00 : f32
    %7 = vector.broadcast %cst_6 : f32 to vector<24x16xf32>
    %8 = arith.maximumf %6, %7 : vector<24x16xf32>
    %9 = arith.truncf %8 : vector<24x16xf32> to vector<24x16xbf16>
    %c0_7 = arith.constant 0 : index
    %c0_8 = arith.constant 0 : index
    %c0_9 = arith.constant 0 : index
    %10 = vector.load %arg5[%c0_7, %c0_8, %c0_9] : memref<1x24x16xbf16, #tpu.memory_space<vmem>>, vector<1x24x16xbf16>
    %11 = vector.shape_cast %10 : vector<1x24x16xbf16> to vector<24x16xbf16>
    %12 = vector.shape_cast %9 : vector<24x16xbf16> to vector<1x24x16xbf16>
    tpu.vector_store %arg5[%c0_7, %c0_8, %c0_9], %12 {strides = array<i32>} : memref<1x24x16xbf16, #tpu.memory_space<vmem>>, vector<1x24x16xbf16>,
    return
  }
  func.func @transform_0(%arg0: i32, %arg1: i32) -> (i32, i32, i32) {
    %c0_i32 = arith.constant 0 : i32
    %c0_i32_0 = arith.constant 0 : i32
    return %arg0, %c0_i32, %arg1 : i32, i32, i32
  }
  func.func @transform_1(%arg0: i32, %arg1: i32) -> (i32, i32) {
    %c0_i32 = arith.constant 0 : i32
    %c0_i32_0 = arith.constant 0 : i32
    %c0_i32_1 = arith.constant 0 : i32
    return %c0_i32, %c0_i32_0 : i32, i32
  }
  func.func @transform_2(%arg0: i32, %arg1: i32) -> (i32, i32) {
    %c0_i32 = arith.constant 0 : i32
    %c0_i32_0 = arith.constant 0 : i32
    %c0_i32_1 = arith.constant 0 : i32
    return %c0_i32, %c0_i32_0 : i32, i32
  }
  func.func @transform_3(%arg0: i32, %arg1: i32) -> (i32, i32, i32) {
    %c0_i32 = arith.constant 0 : i32
    %c0_i32_0 = arith.constant 0 : i32
    return %arg0, %c0_i32, %arg1 : i32, i32, i32
  }
}

</mosaic_0001>

<bundles_post_ra>
// kernel: tpu_custom_call.1
= control target key start
LH: loop header
LB: loop body
LE: loop exit
PB: predicated region body
PF: predicated region fallthrough
CT: control target
= control target key end

     0   :  { %s528_s12 = smov 0   ;;  %s530_s13 = smov 0   ;;  %s586_s0 = inlined_call_operand.vmem [shape: f32[4,4,16], index: 0, kind: input, shape index: {}]   ;;  %s587_s1 = inlined_call_operand.vmem [shape: f32[24,4], index: 1, kind: input, shape index: {}]   ;;  %s588_s2 = inlined_call_operand.vmem [shape: f32[24,1], index: 2, kind: input, shape index: {}]   ;;  %s589_s3 = inlined_call_operand.vmem [shape: bf16[4,24,16], index: 3, kind: output, shape index: {}]  }
   0x1   :  { %s532_s14 = smov 0  }
   0x2 LB: > { %s25_s15 = sadd.s32 1, %s499_s13  ;;  %p419_p0 = scmp.ge.s32.totalorder %s503_s14, 1  ;;  %s503_s14 = sphi %s532_s14, %s13_s14   ;;  %s499_s13 = sphi %s530_s13, %s591_s13   ;;  %s495_s12 = sphi %s528_s12, %s590_s12  }
   0x3   : > { %p27_p1 = scmp.ge.s32.totalorder %s25_s15, 4  ;;  %p155_p2 = scmp.lt.s32.totalorder %s503_s14, 5 }
   0x5   : > { %s593_s15 = smov (%p27_p1, %s25_s15), 0  ;;  %p156_p3 = pnand %p419_p0, %p155_p2 }
   0x6   : > { %p184_p4 = scmp.lt.s32.totalorder (!%p156_p3), %s495_s12, 3  ;;  %v505_v0 = vmov (!%p156_p3), 0.0   ;;  %v203_v1 = vld [vmem:[%s588_s2] sm:$0xff] (!%p156_p3)  ;;  %vm506_vm0 = vmmov (!%p156_p3), 0   ;;  %v205_v2 = vld [vmem:[%s588_s2 + $0x10] sm:$0xff] (!%p156_p3)  ;;  %v507_v3 = vmov (!%p156_p3), 0  }
   0x7   : > { %159 = sbr.rel (%p156_p3) target bundleno = 242 (0xf2), region = 32  ;;  %438 = vmatprep.subr.mxu0 (!%p156_p3), %v505_v0  ;;  %449 = vmatprep.subr.mxu1 (!%p156_p3), %v505_v0  ;;  %vm231_vm1 = vcmask (!%p156_p3), 1043456   ;;  %v200_v4 = vld [vmem:[%s587_s1] sm:$0xff] (!%p156_p3)  ;;  %vm221_vm2 = vcmask (!%p156_p3), 31744   ;;  %v201_v5 = vld [vmem:[%s587_s1 + $0x8] sm:$0xff] (!%p156_p3)  ;;  %v202_v8 = vld [vmem:[%s587_s1 + $0x10] sm:$0xff] (!%p156_p3) }
   0x8   : > { %440 = vmatprep.mubr.msk.f32.mxu0 (!%p156_p3), %vm506_vm0, %v505_v0  ;;  %443 = vmatprep.mubr.msk.f32.mxu1 (!%p156_p3), %vm506_vm0, %v505_v0  ;;  %v204_v7 = vld [vmem:[%s588_s2 + $0x8] sm:$0xff] (!%p156_p3)  ;;  %vm331_vm3 = vcmask (!%p156_p3), 125952  }
   0x9   : > { %479 = vset.pattern.permute.xlu0 (!%p156_p3), %v507_v3  ;;  %480 = vset.pattern.permute.xlu1 (!%p156_p3), %v507_v3 }
   0xa   : > { %208 = vperm.xlu0 (!%p156_p3), %479, %v203_v1   ;;  %218 = vperm.xlu1 (!%p156_p3), %480, %v205_v2  }
   0xe   : > { %s595_s12 = smov (!%p184_p4, %s495_s12), 3  ;;  %213 = vperm.xlu0 %479, %v204_v7  }
   0xf   : > { %s420_s20 = sshll.u32 %s595_s12, 2  ;;  %s451_s5 = smul.u32 12, %s595_s12 }
  0x10   : > { %s190_s23 = scalar_lea.vmem %s586_s0, %s420_s20 }
  0x11   : > { %v199_v6 = vld [vmem:[%s190_s23] sm:$0xf]  ;;  %s198_s8 = scalar_lea.vmem %s589_s3, %s451_s5 }
  0x12   : > { %439 = vmatpush3.msk.msra.mxu0 %vm231_vm1, %v199_v6  ;;  %450 = vmatpush3.msk.msra.mxu1 %vm231_vm1, %v199_v6 }
  0x13   : > { %441 = vmatmul.mubr.msk.f32.vlgmr.msra.gmra.mrb[0].mxu0 %vm221_vm2, %v200_v4  ;;  %444 = vmatmul.mubr.msk.f32.vlgmr.msra.gmra.mrb[0].mxu1 %vm221_vm2, %v201_v5 }
  0x14   : > { %446 = vmatprep.mubr.msk.f32.mxu1 %vm506_vm0, %v505_v0 }
  0x17   : > { %447 = vmatmul.mubr.msk.f32.gmra.mrb[2].mxu1 %vm221_vm2, %v202_v8 }
  0x89   : > { %v209_v9 = vpop.permute.xlu0 %208  ;;  %v219_v17 = vpop.permute.xlu1 %218 }
  0x8d   : > { %v214_v10 = vpop.permute.xlu0 %213 }
  0xe6   : > { %v301_v11 = vpop.f32.mrb[0].mxu0  ;;  %v306_v12 = vpop.f32.mrb[0].mxu1 }
  0xe7   : > { %v302_v13 = vadd.f32 %v301_v11, %v209_v9  ;;  %v307_v14 = vadd.f32 %v306_v12, %v214_v10  ;;  %v445_v15 = vpop.f32.mrb[1].mxu1  ;;  %v442_v16 = vpop.f32.mrb[1].mxu0 }
  0xe9   : > { %v315_v18 = vmax.f32 %v302_v13, 0.0  ;;  %v316_v19 = vmax.f32 %v307_v14, 0.0 }
  0xea   : > { %v311_v20 = vpop.f32.mrb[2].mxu1 }
  0xeb   : > { %v431_v21 = vpack.c.bf16 %v315_v18, %v315_v18  ;;  %v432_v22 = vpack.c.bf16 %v316_v19, %v316_v19  ;;  %v312_v23 = vadd.f32 %v311_v20, %v219_v17  ;;  %v448_v24 = vpop.f32.mrb[3].mxu1 }
  0xed   : > { %332 = vst.msk [vmem:[%s198_s8] sm:$0xf] %vm331_vm3, %v431_v21  ;;  %333 = vst.msk [vmem:[%s198_s8 + $0x4] sm:$0xf] %vm331_vm3, %v432_v22  ;;  %v317_v25 = vmax.f32 %v312_v23, 0.0 }
  0xef   : > { %v433_v26 = vpack.c.bf16 %v317_v25, %v317_v25 }
  0xf1   : > { %334 = vst.msk [vmem:[%s198_s8 + $0x8] sm:$0xf] %vm331_vm3, %v433_v26 }
  0xf2 PF: > { %s13_s14 = sadd.s32 1, %s503_s14   ;;  %s590_s12 = smov %s499_s13 }
  0xf3   : > { %p10_p5 = scmp.ge.s32.totalorder %s13_s14, 6   ;;  %s591_s13 = smov %s593_s15 }
  0xf5   :  { %12 = sbr.rel (!%p10_p5) target bundleno = 2 (0x2), region = 62 }

</bundles_post_ra>
